<compile_context>
chip_gen: v6e
topology: v6e:2x2x1
jax: 0.10.0
libtpu: 0.0.40
codegen_flags: <defaults>
</compile_context>

<pallas_src>
import jax
import jax.numpy as jnp
from jax.experimental import pallas as pl
from jax.experimental.pallas import tpu as pltpu


# ---------------------------------------------------------------------------
# Pallas kernels
# ---------------------------------------------------------------------------
def _pool_partial_kernel(x_ref, part_ref):
    """grid = (core split [parallel], row-block [arbitrary, reduction]).

    Accumulates the spatial sum of this split's lane-dense rows into row 0 of
    its resident (8, lane) output block.  The row reduction is a (1, tr) @
    (tr, lane) matmul so it rides the MXU instead of the XLU.
    """
    @pl.when(pl.program_id(1) == 0)
    def _():
        part_ref[...] = jnp.zeros_like(part_ref)

    x = x_ref[...].astype(jnp.float32)
    ones = jnp.ones((1, x.shape[0]), jnp.float32)
    part_ref[0:1, :] += jnp.dot(ones, x, preferred_element_type=jnp.float32)


def _gate_kernel(part_ref, fold_ref, w1_ref, b1_ref, w2_ref, b2_ref,
                 unfold_ref, gate_ref):
    """Single step: partial sums -> per-channel mean -> FC1 -> ReLU -> FC2 ->
    sigmoid -> lane-dense gate row."""
    total = jnp.sum(part_ref[...], axis=0, keepdims=True)            # (1, lane)
    # fold carries the 1/M factor, so this is the per-channel mean (1, C).
    pooled = jnp.dot(total, fold_ref[...],
                     preferred_element_type=jnp.float32)
    hidden = jnp.dot(pooled, w1_ref[...],
                     preferred_element_type=jnp.float32) + b1_ref[...]
    hidden = jnp.maximum(hidden, 0.0)
    gate = jax.nn.sigmoid(
        jnp.dot(hidden, w2_ref[...],
                preferred_element_type=jnp.float32) + b2_ref[...])
    # unfold the (1, C) gate back to a lane-dense (1, lane) row so the
    # broadcast kernel does full-lane unmasked stores.
    gate_ref[...] = jnp.dot(gate, unfold_ref[...],
                            preferred_element_type=jnp.float32
                            ).astype(gate_ref.dtype)


def _broadcast_kernel(gate_ref, o_ref):
    """grid = row-block [parallel]: broadcast the gate row over the slab."""
    o_ref[...] = jnp.broadcast_to(gate_ref[...],
                                  o_ref.shape).astype(o_ref.dtype)


# ---------------------------------------------------------------------------
# Tiling / VMEM helpers
# ---------------------------------------------------------------------------
def _vmem_limit_bytes():
    """Explicit scoped-VMEM budget derived from the chip's physical VMEM."""
    phys = 64 << 20  # conservative default (v7x per-TensorCore VMEM)
    try:
        phys = int(pltpu.get_tpu_info().vmem_capacity_bytes)
    except Exception:
        pass
    # ~48 MiB on v7x (64 MiB physical), ~96 MiB on v5e/v6e (128 MiB physical).
    return min(phys * 3 // 4, 96 << 20)


def _row_candidates(mr):
    """Row-block sizes that satisfy the (8, 128) sublane rule for a [mr, lane]
    slab: divisors of mr that are multiples of 8, plus mr itself."""
    cands = {mr}
    for d in range(8, mr + 1, 8):
        if mr % d == 0:
            cands.add(d)
    return sorted(cands)


def _choose_tiling(M, C, itemsize, max_block_bytes, min_grid=8):
    """Pick (lane, rows-per-block): lane a multiple of 128 (lane % C == 0),
    blocks as large as possible up to max_block_bytes while keeping
    >= min_grid row-blocks for pipeline depth, preferring wider lanes."""
    total = M * C
    best = None
    for lane in (4096, 2048, 1024, 512, 256, 128):
        if lane % C != 0 or total % lane != 0:
            continue
        mr = total // lane
        for tr in _row_candidates(mr):
            blk = tr * lane * itemsize
            if blk > max_block_bytes:
                continue
            grid_r = mr // tr
            score = (
                min(grid_r, min_grid),                        # pipeline depth
                blk,                                          # big blocks
                1 if (grid_r % 2 == 0 or grid_r == 1) else 0,  # 2-core split
                lane,                                         # wide stores
            )
            if best is None or score > best[0]:
                best = (score, lane, tr)
    if best is not None:
        return best[1], best[2]

    # Fallback: lane = C (< 128 => wasted lanes / masked stores), still correct.
    # TODO(synk): pad-and-mask tail path for shapes where no 128-multiple lane
    # divides the slab; this path is ~3-4x slower on HBM efficiency.
    mr = M
    tr = mr
    for cand in reversed(_row_candidates(mr)):
        if cand * C * itemsize <= max_block_bytes:
            tr = cand
            break
    return C, tr


# ---------------------------------------------------------------------------
# Wrapper
# ---------------------------------------------------------------------------
def gffb_forward(x, params):
    """x: [1, D, H, W, C] contiguous NDHWC view of the NCDHW torch input.

    Returns sigmoid(FC2(relu(FC1(mean_{D,H,W}(x))))) broadcast to x.shape,
    i.e. the x_cam the PyTorch module returns.
    """
    N, D, H, W, C = x.shape
    assert N == 1, "GFFB's flatten-before-FC requires batch == 1"
    M = D * H * W

    w1, b1 = params["cam_FC1"]   # [C, Cr], [Cr]
    w2, b2 = params["cam_FC2"]   # [Cr, C], [C]
    Cr = w1.shape[1]

    itemsize = x.dtype.itemsize
    vmem_limit = _vmem_limit_bytes()
    # ~4 MiB streaming blocks (near HBM roofline), but never more than 1/8 of
    # the scoped-VMEM budget (double-buffered blocks in both passes + slack).
    max_block = min(4 << 20, vmem_limit // 8)

    lane, tr = _choose_tiling(M, C, itemsize, max_block)
    mr = (M * C) // lane
    grid_r = mr // tr
    # Shard the reduction's row-blocks across 2 TensorCores when possible
    # (~2x read bandwidth on v7x, harmless serial loop on v5e/v6e).
    n_splits = 2 if (grid_r % 2 == 0 and grid_r >= 2) else 1
    grid_inner = grid_r // n_splits

    # zero-copy lane-dense re-view of the contiguous [M, C] slab
    x2d = x.reshape(mr, lane)

    # ---- pass 1: per-split partial spatial sums (read pass) ----------------
    partials = pl.pallas_call(
        _pool_partial_kernel,
        out_shape=jax.ShapeDtypeStruct((n_splits * 8, lane), jnp.float32),
        grid=(n_splits, grid_inner),
        in_specs=[pl.BlockSpec((tr, lane),
                               lambda s, r: (s * grid_inner + r, 0))],
        out_specs=pl.BlockSpec((8, lane), lambda s, r: (s, 0)),
        compiler_params=pltpu.CompilerParams(
            dimension_semantics=("parallel", "arbitrary"),
            vmem_limit_bytes=vmem_limit),
    )(x2d)

    # ---- pass 2: tiny gate kernel (fold -> FC1 -> ReLU -> FC2 -> sigmoid) --
    # column l of the lane-dense view always holds channel l % C
    ch = jnp.arange(lane) % C
    onehot = jax.nn.one_hot(ch, C, dtype=jnp.float32)        # (lane, C)
    fold = onehot / float(M)                                  # mean fold
    unfold = onehot.T                                         # (C, lane) tile

    gate_row = pl.pallas_call(
        _gate_kernel,
        out_shape=jax.ShapeDtypeStruct((1, lane), jnp.float32),
        grid=(1,),
        in_specs=[
            pl.BlockSpec((n_splits * 8, lane), lambda i: (0, 0)),   # partials
            pl.BlockSpec((lane, C), lambda i: (0, 0)),              # fold
            pl.BlockSpec((C, Cr), lambda i: (0, 0)),                # w1
            pl.BlockSpec((1, Cr), lambda i: (0, 0)),                # b1
            pl.BlockSpec((Cr, C), lambda i: (0, 0)),                # w2
            pl.BlockSpec((1, C), lambda i: (0, 0)),                 # b2
            pl.BlockSpec((C, lane), lambda i: (0, 0)),              # unfold
        ],
        out_specs=pl.BlockSpec((1, lane), lambda i: (0, 0)),
        compiler_params=pltpu.CompilerParams(
            dimension_semantics=("arbitrary",),
            vmem_limit_bytes=vmem_limit),
    )(partials, fold,
      w1.astype(jnp.float32), b1.reshape(1, Cr).astype(jnp.float32),
      w2.astype(jnp.float32), b2.reshape(1, C).astype(jnp.float32),
      unfold)

    # ---- pass 3: broadcast the gate row over the slab (write pass) ---------
    out2d = pl.pallas_call(
        _broadcast_kernel,
        out_shape=jax.ShapeDtypeStruct((mr, lane), x.dtype),
        grid=(grid_r,),
        in_specs=[pl.BlockSpec((1, lane), lambda i: (0, 0))],
        out_specs=pl.BlockSpec((tr, lane), lambda i: (i, 0)),
        compiler_params=pltpu.CompilerParams(
            dimension_semantics=("parallel",),
            vmem_limit_bytes=vmem_limit),
    )(gate_row)

    return out2d.reshape(N, D, H, W, C)


# ---------------------------------------------------------------------------
# Pure-JAX reference (for correctness check)
# ---------------------------------------------------------------------------
def gffb_ref(x, params):
    pooled = jnp.mean(x, axis=(1, 2, 3))                     # (N, C)
    w1, b1 = params["cam_FC1"]
    w2, b2 = params["cam_FC2"]
    h = jnp.maximum(pooled @ w1 + b1, 0.0)
    gate = jax.nn.sigmoid(h @ w2 + b2)                       # (N, C)
    return jnp.broadcast_to(gate[:, None, None, None, :], x.shape)


# ---------------------------------------------------------------------------
# Deterministic example
# ---------------------------------------------------------------------------
if __name__ == "__main__":
    v_size = 32          # channels (module expects v_size % 8 == 0)
    reduction = 1
    N, D, H, W = 1, 16, 16, 16   # batch must be 1 (module flattens before FC)

    key = jax.random.PRNGKey(0)
    kx, k1, k2, k3, k4 = jax.random.split(key, 5)
    Cr = v_size // reduction

    # NDHWC input (the NCDHW torch tensor would be its transpose (0, 2, 3, 4, 1))
    x = jax.random.normal(kx, (N, D, H, W, v_size), jnp.float32)

    params = {
        # stored [in, out] for right-multiplication (torch Linear is [out, in])
        "cam_FC1": (jax.random.normal(k1, (v_size, Cr), jnp.float32) * 0.1,
                    jax.random.normal(k2, (Cr,), jnp.float32) * 0.1),
        "cam_FC2": (jax.random.normal(k3, (Cr, v_size), jnp.float32) * 0.1,
                    jax.random.normal(k4, (v_size,), jnp.float32) * 0.1),
    }

    out = jax.block_until_ready(gffb_forward(x, params))
    ref = jax.block_until_ready(gffb_ref(x, params))

    assert out.shape == (N, D, H, W, v_size)
    assert jnp.max(jnp.abs(out - ref)) < 1e-4, "mismatch vs reference"

    print("KERNEL_OK")
</pallas_src>

<mosaic_0001>
module attributes {stable_mosaic.version = 11 : i64} {
  func.func @_pool_partial_kernel(%arg0: i32, %arg1: i32, %arg2: memref<8x2048xf32, #tpu.memory_space<vmem>>, %arg3: memref<8x2048xf32, #tpu.memory_space<vmem>>) attributes {dimension_semantics = [#tpu.dimension_semantics<parallel>, #tpu.dimension_semantics<arbitrary>], iteration_bounds = array<i64: 2, 4>, scalar_prefetch = 0 : i64, scratch_operands = 0 : i64, tpu.core_type = #tpu.core_type<tc>, window_params = [{transform_indices = @transform_0, window_bounds = array<i64: 8, 2048>}, {transform_indices = @transform_1, window_bounds = array<i64: 8, 2048>}]} {
    %c0_i32 = arith.constant 0 : i32
    %0 = arith.cmpi eq, %arg1, %c0_i32 : i32
    %1 = arith.extui %0 : i1 to i32
    %c0_i32_0 = arith.constant 0 : i32
    %2 = arith.cmpi ne, %1, %c0_i32_0 : i32
    scf.if %2 {
      %cst_7 = arith.constant 0.000000e+00 : f32
      %9 = vector.broadcast %cst_7 : f32 to vector<8x2048xf32>
      %c0_8 = arith.constant 0 : index
      %c0_9 = arith.constant 0 : index
      %10 = vector.load %arg3[%c0_8, %c0_9] : memref<8x2048xf32, #tpu.memory_space<vmem>>, vector<8x2048xf32>
      tpu.vector_store %arg3[%c0_8, %c0_9], %9 {strides = array<i32>} : memref<8x2048xf32, #tpu.memory_space<vmem>>, vector<8x2048xf32>,
    } else {
    }
    %c0 = arith.constant 0 : index
    %c0_1 = arith.constant 0 : index
    %3 = vector.load %arg2[%c0, %c0_1] : memref<8x2048xf32, #tpu.memory_space<vmem>>, vector<8x2048xf32>
    %cst = arith.constant 1.000000e+00 : f32
    %4 = vector.broadcast %cst : f32 to vector<1x8xf32>
    %c0_2 = arith.constant 0 : index
    %c0_3 = arith.constant 0 : index
    %5 = vector.load %arg3[%c0_2, %c0_3] : memref<8x2048xf32, #tpu.memory_space<vmem>>, vector<1x2048xf32>
    %cst_4 = arith.constant dense<0.000000e+00> : vector<1x2048xf32>
    %6 = tpu.matmul %4, %3, %cst_4 {dimension_numbers = #tpu.dot_dimension_numbers<[1], [0], [0], [1], [0, 0, 1, 1], [], []>} : vector<1x8xf32>, vector<8x2048xf32>, vector<1x2048xf32> -> vector<1x2048xf32>
    %7 = arith.addf %5, %6 : vector<1x2048xf32>
    %c0_5 = arith.constant 0 : index
    %c0_6 = arith.constant 0 : index
    %8 = vector.load %arg3[%c0_5, %c0_6] : memref<8x2048xf32, #tpu.memory_space<vmem>>, vector<1x2048xf32>
    tpu.vector_store %arg3[%c0_5, %c0_6], %7 {strides = array<i32>} : memref<8x2048xf32, #tpu.memory_space<vmem>>, vector<1x2048xf32>,
    return
  }
  func.func @transform_0(%arg0: i32, %arg1: i32) -> (i32, i32) {
    %c4_i32 = arith.constant 4 : i32
    %0 = arith.muli %arg0, %c4_i32 : i32
    %1 = arith.addi %0, %arg1 : i32
    %c0_i32 = arith.constant 0 : i32
    %c0_i32_0 = arith.constant 0 : i32
    return %1, %c0_i32 : i32, i32
  }
  func.func @transform_1(%arg0: i32, %arg1: i32) -> (i32, i32) {
    %c0_i32 = arith.constant 0 : i32
    %c0_i32_0 = arith.constant 0 : i32
    return %arg0, %c0_i32 : i32, i32
  }
}

</mosaic_0001>

<bundles_post_ra>
// kernel: tpu_custom_call.1
= control target key start
LH: loop header
LB: loop body
LE: loop exit
PB: predicated region body
PF: predicated region fallthrough
CT: control target
= control target key end

     0   :  { %6 = vsyncpa [#allocation3], 0  ;;  %s1543_s0 = inlined_call_operand.hbm [shape: f32[64,2048], index: 0, kind: input, shape index: {}]   ;;  %s1544_s1 = inlined_call_operand.hbm [shape: f32[16,2048], index: 1, kind: output, shape index: {}]  }
   0x1   :  { %8 = vsyncpa [#allocation3 + $0x1], 0 }
   0x2   :  { %9 = vsyncpa [#allocation4], 0 }
   0x3   :  { %11 = vsyncpa [#allocation4 + $0x1], 0  ;;  %s1293_s6 = smov 0   ;;  %s1295_s7 = smov 0  }
   0x4   :  { %s1297_s8 = smov 0   ;;  %s1299_s9 = smov 0  }
   0x5   :  { %s1301_s10 = smov 0   ;;  %s1303_s11 = smov 0  }
   0x6   :  { %s1305_s12 = smov 0   ;;  %s1307_s13 = smov 0  }
   0x7   :  { %s1309_s14 = smov 0   ;;  %s1311_s15 = smov 0  }
   0x8   :  { %s1313_s16 = smov 0  }
   0x9 LB: > { %s988_s17 = sadd.s32 4294967295, %s1275_s16   ;;  %s989_s18 = sadd.s32 4294967294, %s1275_s16   ;;  %s1275_s16 = sphi %s1313_s16, %s17_s16   ;;  %s1271_s15 = sphi %s1311_s15, %s1563_s15   ;;  %s1267_s14 = sphi %s1309_s14, %s1562_s14   ;;  %s1263_s13 = sphi %s1307_s13, %s1561_s13   ;;  %s1259_s12 = sphi %s1305_s12, %s1560_s12   ;;  %s1255_s11 = sphi %s1303_s11, %s1559_s11   ;;  %s1251_s10 = sphi %s1301_s10, %s1558_s10   ;;  %s1247_s9 = sphi %s1299_s9, %s1557_s9   ;;  %s1243_s8 = sphi %s1297_s8, %s1556_s8   ;;  %s1239_s7 = sphi %s1295_s7, %s1555_s7   ;;  %s1235_s6 = sphi %s1293_s6, %s1554_s6  }
   0xa   : > { %s26_s19 = sadd.s32 1, %s1267_s14  ;;  %s29_s20 = sadd.s32 1, %s1271_s15 }
   0xb   : > { %p27_p0 = scmp.ge.s32.totalorder %s26_s19, 4  ;;  %s990_s21 = sshll.u32 %s1271_s15, 2 }
   0xc   : > { %s1352_s22 = sadd.s32 %s1267_s14, %s990_s21  ;;  %s40_s23 = sadd.s32 1, %s1255_s11 }
   0xd   : > { %s1565_s19 = smov (%p27_p0, %s26_s19), 0  ;;  %s1567_s20 = smov (!%p27_p0, %s29_s20), %s1271_s15 }
   0xe   : > { %p47_p1 = scmp.ne.s32.totalorder %s1255_s11, %s1251_s10  ;;  %p48_p2 = scmp.eq.s32.totalorder %s1275_s16, 0 }
   0xf   : > { %p31_p3 = scmp.ge.s32.totalorder %s1567_s20, 2  ;;  %p53_p4 = scmp.ne.s32.totalorder %s1251_s10, %s1247_s9 }
  0x10   : > { %p1362_p5 = por %p48_p2, %p47_p1  ;;  %p54_p6 = scmp.eq.s32.totalorder %s988_s17, 0 }
  0x11   : > { %s1569_s20 = smov (%p31_p3, %s1567_s20), 0  ;;  %s66_s26 = sadd.s32 1, %s1243_s8 }
  0x12   : > { %1547 = sst [smem:[#allocation8_spill]] %s1569_s20  ;;  %p1368_p7 = por %p54_p6, %p53_p4 }
  0x13   : > { %s991_s27 = sshll.u32 %s1569_s20, 2  ;;  %s63_s28 = ssub.s32 %s1271_s15, %s1569_s20 }
  0x14   : > { %s36_s29 = sadd.s32 %s991_s27, %s1565_s19  ;;  %p64_p8 = scmp.eq.s32.totalorder %s63_s28, 0 }
  0x15   : > { %s37_s30 = ssub.s32 %s1352_s22, %s36_s29  ;;  %p76_p9 = scmp.ne.s32.totalorder %s1243_s8, %s1239_s7 }
  0x16   : > { %p38_p10 = scmp.eq.s32.totalorder %s37_s30, 0  ;;  %p77_p11 = scmp.eq.s32.totalorder %s988_s17, 7 }
  0x17   : > { %s1381_s2 = scalar_select %p64_p8, %s1243_s8, %s66_s26  }
  0x18   : > { %s1384_s3 = scalar_select %p38_p10, %s1255_s11, %s40_s23  }
  0x19   : > { %p1386_p12 = por %p77_p11, %p76_p9  ;;  %p82_p13 = scmp.ne.s32.totalorder %s1239_s7, %s1235_s6 }
  0x1a   : > { %p83_p0 = scmp.eq.s32.totalorder %s989_s18, 7  ;;  %p1033_p1 = scmp.lt.s32.totalorder %s1275_s16, 8 }
  0x1b   : > { %s103_s5 = sand.u32 1, %s1255_s11   ;;  %s1019_s21 = sshll.u32 %s1352_s22, 11 }
  0x1c   : > { %p1396_p2 = por %p83_p0, %p82_p13  ;;  %s994_s17 = sshll.u32 %s103_s5, 7 }
  0x1d   : > { %s115_s23 = scalar_lea.hbm %s1543_s0, %s1019_s21  ;;  %s107_s28 = scalar_lea.vmem [#allocation2], %s994_s17 }
  0x1e   : > { %s1550_s9 = scalar_select %p1396_p2, 1, 0 }
  0x1f   : > { %s117_s29 = sshll.u32 %s107_s28, 4  ;;  %p1406_p3 = pnand %p1033_p1, %p1362_p5  ;;  %s118_s29 = int_to_ptr.vmem [resolvable:$true] %s117_s29 }
  0x20   : > { %p998_p4 = scmp.ge.s32.totalorder %s1275_s16, 1  ;;  %p122_p6 = scmp.lt.s32.totalorder %s1275_s16, 9 }
  0x21   : > { %s104_s18 = scalar_lea.sflag [#allocation3], %s103_s5  ;;  %p1129_p8 = pneg %p1406_p3 }
  0x22   : > { %s1140_s20 = scalar_lea.vmem %s118_s29, 2048  ;;  %s1277_s22 = smov [#allocation2]  }
  0x23   : > { %p1141_p9 = scmp.ne.s32.totalorder %s118_s29, %s1140_s20  ;;  %s1145_s21 = sshll.u32 %s1277_s22, 4  ;;  %s1146_s21 = int_to_ptr.vmem [resolvable:$false] %s1145_s21 }
  0x24   : > { %s1147_s17 = scalar_lea.vmem %s1146_s21, 4096  ;;  %p1148_p13 = scmp.lt.s32.totalorder %s118_s29, %s1146_s21 }
  0x25   : > { %p1143_p10 = pnand %p1141_p9, %p1129_p8  ;;  %p1149_p5 = scmp.lt.s32.totalorder %s1147_s17, %s1140_s20 }
  0x27   : > { %p1144_p11 = pneg %p1143_p10  ;;  %p1150_p0 = por %p1149_p5, %p1148_p13 }
  0x29   : > { %p1151_p1 = pnand %p1150_p0, %p1144_p11 }
  0x2b   : > { %1154 = shalt.err (!%p1151_p1)
}
  0x2c   : > { %1028 = dma.hbm_to_vmem [thread:$0]  (!%p1406_p3), %s115_s23, 2048, %s118_s29, %s104_s18  }
  0x2d   : > { %p123_p2 = pnand %p998_p4, %p122_p6 }
  0x2e   : > { %s128_s24 = sand.u32 (!%p123_p2), 1, %s1251_s10  }
  0x2f   : > { %126 = sbr.rel (%p123_p2) target bundleno = 305 (0x131), region = 24  ;;  %s999_s5 = sshll.u32 (!%p123_p2), %s128_s24, 7 }
  0x30   : > { %s129_s26 = scalar_lea.sflag (!%p123_p2), [#allocation3], %s128_s24  ;;  %s1421_s27 = scalar_lea.vmem (!%p123_p2), [#allocation2], %s999_s5 }
  0x34   : > { %1226 = dma.done.wait (%p1368_p7), %s129_s26, 2048  }
  0x35   : > { %1228 = vsyncadd (%p1368_p7), %s129_s26, 4294965248  ;;  %s148_s20 = sand.u32 1, %s1239_s7   ;;  %p1001_p2 = scmp.ne.s32.totalorder %s1259_s12, 0 }
  0x36   : > { %s1000_s23 = sshll.u32 %s148_s20, 7 }
  0x37   : > { %s1430_s28 = scalar_lea.vmem [#allocation5], %s1000_s23  ;;  %156 = sbr.rel (%p1001_p2) target bundleno = 69 (0x45), region = 32 }
  0x3c   : > { %v1278_v0 = vmov 0.0  }
  0x3d   : > { %157 = vst [vmem:[%s1430_s28] sm:$0xff] %v1278_v0  ;;  %158 = vst [vmem:[%s1430_s28 + $0x8] sm:$0xff] %v1278_v0 }
  0x3e   : > { %159 = vst [vmem:[%s1430_s28 + $0x10] sm:$0xff] %v1278_v0  ;;  %160 = vst [vmem:[%s1430_s28 + $0x18] sm:$0xff] %v1278_v0 }
  0x3f   : > { %161 = vst [vmem:[%s1430_s28 + $0x20] sm:$0xff] %v1278_v0  ;;  %162 = vst [vmem:[%s1430_s28 + $0x28] sm:$0xff] %v1278_v0 }
  0x40   : > { %163 = vst [vmem:[%s1430_s28 + $0x30] sm:$0xff] %v1278_v0  ;;  %164 = vst [vmem:[%s1430_s28 + $0x38] sm:$0xff] %v1278_v0 }
  0x41   : > { %165 = vst [vmem:[%s1430_s28 + $0x40] sm:$0xff] %v1278_v0  ;;  %166 = vst [vmem:[%s1430_s28 + $0x48] sm:$0xff] %v1278_v0 }
  0x42   : > { %167 = vst [vmem:[%s1430_s28 + $0x50] sm:$0xff] %v1278_v0  ;;  %168 = vst [vmem:[%s1430_s28 + $0x58] sm:$0xff] %v1278_v0 }
  0x43   : > { %169 = vst [vmem:[%s1430_s28 + $0x60] sm:$0xff] %v1278_v0  ;;  %170 = vst [vmem:[%s1430_s28 + $0x68] sm:$0xff] %v1278_v0 }
  0x44   : > { %171 = vst [vmem:[%s1430_s28 + $0x70] sm:$0xff] %v1278_v0  ;;  %172 = vst [vmem:[%s1430_s28 + $0x78] sm:$0xff] %v1278_v0 }
  0x45 PF: > { %v174_v1 = vld [vmem:[%s1421_s27 + $0x8] sm:$0xff]  ;;  %v176_v2 = vld [vmem:[%s1421_s27 + $0x18] sm:$0xff]  ;;  %v173_v3 = vld [vmem:[%s1421_s27] sm:$0xff]  ;;  %vm196_vm0 = vcmask 64512   ;;  %v1279_v5 = vmov 0.0   ;;  %v1280_v10 = vmov 1.0   ;;  %v791_v21 = vlaneseq }
  0x46   : > { %230 = vmatprep.subr.mxu0 %v174_v1  ;;  %301 = vmatprep.subr.mxu1 %v176_v2  ;;  %v175_v4 = vld [vmem:[%s1421_s27 + $0x10] sm:$0xff]  ;;  %v178_v6 = vld [vmem:[%s1421_s27 + $0x28] sm:$0xff]  ;;  %v180_v7 = vld [vmem:[%s1421_s27 + $0x38] sm:$0xff]  ;;  %v1281_v19 = vmov 1966171168   ;;  %s1020_s12 = sshll.u32 %s1263_s13, 11 }
  0x47   : > { %231 = vmatpush1.msra.mxu0 %v173_v3  ;;  %264 = vmatprep.mubr.f32.mxu0 %v1279_v5  ;;  %v177_v8 = vld [vmem:[%s1421_s27 + $0x20] sm:$0xff]  ;;  %v179_v9 = vld [vmem:[%s1421_s27 + $0x30] sm:$0xff]  ;;  %v182_v11 = vld [vmem:[%s1421_s27 + $0x48] sm:$0xff]  ;;  %v789_v20 = vunpack.c.l.s4 %v1281_v19  ;;  %v792_v23 = vshrl.u32 %v791_v21, 7  ;;  %s905_s25 = sshll.u32 %s1430_s28, 4  ;;  %s1484_s18 = scalar_lea.hbm %s1544_s1, %s1020_s12  ;;  %s906_s25 = int_to_ptr.vmem [resolvable:$true] %s905_s25 }
  0x48   : > { %302 = vmatpush1.msra.mxu1 %v175_v4  ;;  %335 = vmatprep.mubr.f32.mxu1 %v1279_v5  ;;  %v184_v12 = vld [vmem:[%s1421_s27 + $0x58] sm:$0xff]  ;;  %v181_v13 = vld [vmem:[%s1421_s27 + $0x40] sm:$0xff]  ;;  %v183_v14 = vld [vmem:[%s1421_s27 + $0x50] sm:$0xff]  ;;  %s891_s22 = scalar_lea.sflag [#allocation4], %s148_s20  ;;  %s1155_s21 = scalar_lea.vmem %s906_s25, 2048 }
  0x49   : > { %1004 = vmatmul.mubr.msk.f32.vlgmr.msra.gmra.mxu0 %vm196_vm0, %v1280_v10  ;;  %1005 = vmatmul.mubr.msk.f32.vlgmr.msra.gmra.mxu1 %vm196_vm0, %v1280_v10  ;;  %v186_v15 = vld [vmem:[%s1421_s27 + $0x68] sm:$0xff]  ;;  %v188_v16 = vld [vmem:[%s1421_s27 + $0x78] sm:$0xff]  ;;  %v185_v17 = vld [vmem:[%s1421_s27 + $0x60] sm:$0xff]  ;;  %v790_v22 = vunpack.c.0.s8 %v789_v20  ;;  %p1156_p7 = scmp.ne.s32.totalorder %s906_s25, %s1155_s21  ;;  %s1282_s17 = smov [#allocation5]  }
  0x4a   : > { %372 = vmatprep.subr.mxu0 %v178_v6  ;;  %443 = vmatprep.subr.mxu1 %v180_v7  ;;  %v187_v18 = vld [vmem:[%s1421_s27 + $0x70] sm:$0xff]  ;;  %s1159_s13 = sshll.u32 %s1282_s17, 4  ;;  %s1160_s13 = int_to_ptr.vmem [resolvable:$false] %s1159_s13 }
  0x4b   : > { %373 = vmatpush1.msra.mxu0 %v177_v8  ;;  %444 = vmatpush1.msra.mxu1 %v179_v9  ;;  %v793_v26 = vsub.s32 %v790_v22, %v792_v23  ;;  %v189_v43 = vld [vmem:[%s1430_s28] ss:$8 sm:$0xf]  ;;  %p1157_p3 = pnand %p1156_p7, %p1386_p12  ;;  %s1161_s24 = scalar_lea.vmem %s1160_s13, 4096 }
  0x4c   : > { %406 = vmatprep.mubr.f32.mxu0 %v1279_v5  ;;  %477 = vmatprep.mubr.f32.mxu1 %v1279_v5  ;;  %v190_v44 = vld [vmem:[%s1430_s28] ss:$8 sm:$0xf0]  ;;  %p1162_p6 = scmp.lt.s32.totalorder %s906_s25, %s1160_s13  ;;  %p1163_p8 = scmp.lt.s32.totalorder %s1161_s24, %s1155_s21 }
  0x4d   : > { %1006 = vmatmul.mubr.msk.f32.vlgmr.msra.gmra.mxu0 %vm196_vm0, %v1280_v10  ;;  %1007 = vmatmul.mubr.msk.f32.vlgmr.msra.gmra.mxu1 %vm196_vm0, %v1280_v10  ;;  %v191_v51 = vor.u32 %v190_v44, %v189_v43  ;;  %v1002_v3 = vld [vmem:[%s1430_s28 + $0x40] ss:$8 sm:$0xf]  ;;  %p1158_p4 = pneg %p1157_p3 }
  0x4e   : > { %514 = vmatprep.subr.mxu0 %v182_v11  ;;  %585 = vmatprep.subr.mxu1 %v184_v12  ;;  %v1003_v4 = vld [vmem:[%s1430_s28 + $0x40] ss:$8 sm:$0xf0]  ;;  %p1164_p9 = por %p1163_p8, %p1162_p6 }
  0x4f   : > { %515 = vmatpush1.msra.mxu0 %v181_v13  ;;  %586 = vmatpush1.msra.mxu1 %v183_v14  ;;  %v195_v7 = vor.u32 %v1003_v4, %v1002_v3 }
  0x50   : > { %548 = vmatprep.mubr.f32.mxu0 %v1279_v5  ;;  %619 = vmatprep.mubr.f32.mxu1 %v1279_v5  ;;  %p1165_p10 = pnand %p1164_p9, %p1158_p4 }
  0x51   : > { %1008 = vmatmul.mubr.msk.f32.vlgmr.msra.gmra.mxu0 %vm196_vm0, %v1280_v10  ;;  %1009 = vmatmul.mubr.msk.f32.vlgmr.msra.gmra.mxu1 %vm196_vm0, %v1280_v10 }
  0x52   : > { %656 = vmatprep.subr.mxu0 %v186_v15  ;;  %727 = vmatprep.subr.mxu1 %v188_v16 }
  0x53   : > { %657 = vmatpush1.msra.mxu0 %v185_v17  ;;  %728 = vmatpush1.msra.mxu1 %v187_v18 }
  0x54   : > { %690 = vmatprep.mubr.f32.mxu0 %v1279_v5  ;;  %761 = vmatprep.mubr.f32.mxu1 %v1279_v5 }
  0x55   : > { %1010 = vmatmul.mubr.msk.f32.vlgmr.msra.gmra.mxu0 %vm196_vm0, %v1280_v10  ;;  %1011 = vmatmul.mubr.msk.f32.vlgmr.msra.gmra.mxu1 %vm196_vm0, %v1280_v10 }
 0x109   : > { %v266_v24 = vpop.f32.mrf.mxu0  ;;  %v337_v25 = vpop.f32.mrf.mxu1 }
 0x10b   : > { %v268_v27 = vpop.f32.mrf.mxu0  ;;  %v339_v28 = vpop.f32.mrf.mxu1 }
 0x10c   : > { %v784_v29 = vcombine.low %v266_v24, %v268_v27  ;;  %v785_v30 = vcombine.low %v337_v25, %v339_v28 }
 0x10d   : > { %v408_v31 = vpop.f32.mrf.mxu0  ;;  %v479_v32 = vpop.f32.mrf.mxu1 }
 0x10e   : > { %v794_v33 = vrot.slane %v784_v29, %v793_v26  ;;  %v801_v34 = vrot.slane %v785_v30, %v793_v26 }
 0x10f   : > { %v410_v35 = vpop.f32.mrf.mxu0  ;;  %v481_v36 = vpop.f32.mrf.mxu1 }
 0x110   : > { %v786_v37 = vcombine.low %v408_v31, %v410_v35  ;;  %v787_v38 = vcombine.low %v479_v32, %v481_v36  ;;  %v816_v41 = vcombine.low %v794_v33, %v801_v34 }
 0x111   : > { %v550_v39 = vpop.f32.mrf.mxu0  ;;  %v621_v40 = vpop.f32.mrf.mxu1 }
 0x112   : > { %v808_v42 = vrot.slane %v786_v37, %v793_v26  ;;  %v815_v45 = vrot.slane %v787_v38, %v793_v26  ;;  %v824_v54 = vrot.slane %v816_v41, %v793_v26 }
 0x113   : > { %v552_v46 = vpop.f32.mrf.mxu0  ;;  %v623_v47 = vpop.f32.mrf.mxu1 }
 0x114   : > { %v817_v48 = vcombine.low %v808_v42, %v815_v45  ;;  %v833_v49 = vcombine.low %v550_v39, %v552_v46  ;;  %v834_v50 = vcombine.low %v621_v40, %v623_v47 }
 0x115   : > { %v692_v52 = vpop.f32.mrf.mxu0  ;;  %v763_v53 = vpop.f32.mrf.mxu1 }
 0x116   : > { %v831_v55 = vrot.slane %v817_v48, %v793_v26  ;;  %v843_v56 = vrot.slane %v833_v49, %v793_v26  ;;  %v850_v57 = vrot.slane %v834_v50, %v793_v26 }
 0x117   : > { %v694_v58 = vpop.f32.mrf.mxu0  ;;  %v765_v59 = vpop.f32.mrf.mxu1 }
 0x118   : > { %v832_v60 = vcombine.low %v824_v54, %v831_v55  ;;  %v835_v61 = vcombine.low %v692_v52, %v694_v58  ;;  %v836_v62 = vcombine.low %v763_v53, %v765_v59  ;;  %v865_v0 = vcombine.low %v843_v56, %v850_v57 }
 0x11a   : > { %v884_v63 = vadd.f32 %v832_v60, %v191_v51  ;;  %v857_v1 = vrot.slane %v835_v61, %v793_v26  ;;  %v864_v2 = vrot.slane %v836_v62, %v793_v26  ;;  %v873_v6 = vrot.slane %v865_v0, %v793_v26 }
 0x11c   : > { %886 = vst [vmem:[%s1430_s28] ss:$8 sm:$0xf] %v884_v63  ;;  %887 = vst [vmem:[%s1430_s28] ss:$8 sm:$0xf0] %v884_v63  ;;  %v866_v5 = vcombine.low %v857_v1, %v864_v2 }
 0x11e   : > { %v880_v8 = vrot.slane %v866_v5, %v793_v26 }
 0x120   : > { %v881_v9 = vcombine.low %v873_v6, %v880_v8 }
 0x122   : > { %v885_v10 = vadd.f32 %v881_v9, %v195_v7 }
 0x124   : > { %1012 = vst [vmem:[%s1430_s28 + $0x40] ss:$8 sm:$0xf] %v885_v10  ;;  %1013 = vst [vmem:[%s1430_s28 + $0x40] ss:$8 sm:$0xf0] %v885_v10 }
 0x125   : > { %1168 = shalt.err (!%p1165_p10)
}
 0x126   : > { %s1169_s5 = scalar_lea.hbm %s1484_s18, 2048  ;;  %s1173_s20 = scalar_lea.hbm %s1544_s1, 4096 }
 0x127   : > { %p1170_p11 = scmp.ne.s32.totalorder %s1484_s18, %s1169_s5  ;;  %p1174_p0 = scmp.lt.s32.totalorder %s1484_s18, %s1544_s1 }
 0x128   : > { %p1175_p1 = scmp.lt.s32.totalorder %s1173_s20, %s1169_s5 }
 0x129   : > { %p1171_p13 = pnand %p1170_p11, %p1386_p12 }
 0x12a   : > { %p1176_p2 = por %p1175_p1, %p1174_p0 }
 0x12b   : > { %p1172_p5 = pneg %p1171_p13 }
 0x12d   : > { %p1177_p7 = pnand %p1176_p2, %p1172_p5 }
 0x12f   : > { %1180 = shalt.err (!%p1177_p7)
}
 0x130   : > { %1023 = dma.vmem_to_hbm [thread:$0]  (%p1386_p12), %s906_s25, 2048, %s1484_s18, %s891_s22  }
 0x131 PF: > { %p1034_p3 = scmp.ge.s32.totalorder %s1275_s16, 2  ;;  %s917_s12 = sand.u32 1, %s1235_s6  }
 0x132   : > { %p1552_p4 = scmp.ne.s32.totalorder %s1550_s9, 0  ;;  %s918_s29 = scalar_lea.sflag [#allocation4], %s917_s12 }
 0x134   : > { %p1030_p6 = pnand %p1034_p3, %p1552_p4 }
 0x136   : > { %p1031_p8 = pneg %p1030_p6 }
 0x138   : > { %1230 = dma.done.wait (%p1031_p8), %s918_s29, 2048  }
 0x139   : > { %1232 = vsyncadd (%p1031_p8), %s918_s29, 4294965248  ;;  %s17_s16 = sadd.s32 1, %s1275_s16   ;;  %s1553_s4 = sld [smem:[#allocation8_spill]] }
 0x13a   : > { %p14_p9 = scmp.ge.s32.totalorder %s17_s16, 10   ;;  %s1554_s6 = smov %s1239_s7 }
 0x13b   : > { %s1555_s7 = smov %s1243_s8  ;;  %s1556_s8 = smov %s1381_s2 }
 0x13c   : > { %s1557_s9 = smov %s1251_s10  ;;  %s1558_s10 = smov %s1255_s11 }
 0x13d   : > { %s1559_s11 = smov %s1384_s3  ;;  %s1560_s12 = smov %s1267_s14 }
 0x13e   : > { %s1561_s13 = smov %s1271_s15  ;;  %s1562_s14 = smov %s1565_s19 }
 0x13f   : > { %s1563_s15 = smov %s1553_s4  ;;  %16 = sbr.rel (!%p14_p9) target bundleno = 9 (0x9), region = 74 }
 0x144   :  { %923 = vsyncpa [#allocation3], 1 }
 0x145   :  { %925 = vsyncpa [#allocation3 + $0x1], 1 }
 0x146   :  { %926 = vsyncpa [#allocation4], 1 }
 0x147   :  { %928 = vsyncpa [#allocation4 + $0x1], 1 }

</bundles_post_ra>
